<compile_context>
chip_gen: v5e
topology: v5e:2x2
jax: 0.10.0
libtpu: 0.0.40
codegen_flags: <defaults>
</compile_context>

<pallas_src>
import math
import functools

import jax
import jax.numpy as jnp
from jax.experimental import pallas as pl
from jax.experimental.pallas import tpu as pltpu


def _mha_kernel(xq_ref, xkv_ref,
                wq_ref, wk_ref, wv_ref, wo_ref,
                bq_ref, bk_ref, bv_ref, bo_ref,
                *refs,
                d_head: int, with_stats: bool):
    if with_stats:
        out_ref, logits_ref, probs_ref, acc_ref = refs
    else:
        out_ref, acc_ref = refs

    h = pl.program_id(1)              # head index (inner, "arbitrary" axis)

    bt, tq, d = xq_ref.shape          # batch block, query tokens, d_token
    s = xkv_ref.shape[1]              # key/value tokens
    dh = d_head
    scale = 1.0 / math.sqrt(dh)

    # Flatten the batch block into the matmul M dimension.  Only leading dims
    # are merged/split in this kernel; the lane (feature) dim is never sliced.
    xq = xq_ref[...].reshape(bt * tq, d)
    xkv = xkv_ref[...].reshape(bt * s, d)

    wq_h = wq_ref[0]                  # (d, dh)  per-head slice via BlockSpec
    wk_h = wk_ref[0]
    wv_h = wv_ref[0]
    wo_h = wo_ref[0]                  # (dh, d)
    bq_h = bq_ref[0]                  # (1, dh)
    bk_h = bk_ref[0]
    bv_h = bv_ref[0]

    # Per-head projections; q is pre-scaled by 1/sqrt(dh) once.
    q = (jnp.dot(xq, wq_h, preferred_element_type=jnp.float32) + bq_h) * scale
    k = jnp.dot(xkv, wk_h, preferred_element_type=jnp.float32) + bk_h
    v = jnp.dot(xkv, wv_h, preferred_element_type=jnp.float32) + bv_h

    qh = q.reshape(bt, tq, dh)
    kh = k.reshape(bt, s, dh)
    vh = v.reshape(bt, s, dh)

    # logits[b, i, j] = sum_c qh[b, i, c] * kh[b, j, c]   (no explicit K^T)
    logits = jax.lax.dot_general(qh, kh, (((2,), (2,)), ((0,), (0,))),
                                 preferred_element_type=jnp.float32)

    # Numerically stable softmax over the key axis.
    m = jnp.max(logits, axis=-1, keepdims=True)
    e = jnp.exp(logits - m)
    denom = jnp.sum(e, axis=-1, keepdims=True)
    probs = e / denom

    # TODO(synk): attention-prob dropout omitted (dropout=0 / eval semantics).
    if with_stats:
        logits_ref[...] = logits.reshape(bt, 1, tq, s).astype(logits_ref.dtype)
        probs_ref[...] = probs.reshape(bt, 1, tq, s).astype(probs_ref.dtype)

    # ctx[b, i, c] = sum_j probs[b, i, j] * vh[b, j, c]
    ctx = jax.lax.dot_general(probs, vh, (((2,), (1,)), ((0,), (0,))),
                              preferred_element_type=jnp.float32)

    # This head's contribution to the output ("mixing") projection.
    head_out = jnp.dot(ctx.reshape(bt * tq, dh), wo_h,
                       preferred_element_type=jnp.float32)       # (bt*tq, d)

    @pl.when(h == 0)
    def _():
        acc_ref[...] = jnp.zeros_like(acc_ref)

    acc_ref[...] += head_out
    # The output block stays resident across the head axis; writing every step
    # keeps the documented-safe accumulator pattern (final step wins).
    out_ref[...] = (acc_ref[...] + bo_ref[...]).reshape(bt, tq, d).astype(out_ref.dtype)


def _pick_batch_block(B, n_rows):
    """Largest divisor of B with <= ~1024 flattened rows per block, keeping the
    batch grid axis >= 2 (when possible) so both megacore TCs get work."""
    best = 1
    for bt in range(1, B + 1):
        if B % bt:
            continue
        if bt * n_rows > 1024:
            break
        if B >= 2 and B // bt < 2:
            continue
        best = bt
    return best


def multihead_attention(x_q, x_kv, params, *, n_heads: int,
                        return_stats: bool = True,
                        stats_dtype=jnp.float32,
                        batch_block=None):
    """Returns (tokens, {'attention_logits', 'attention_probs'}) like the
    PyTorch module (stats shaped (B*n_heads, Tq, S); omitted if return_stats
    is False).  Weights are stored pre-transposed as (d_in, d_out) so the
    kernel computes y = x @ W + b (equivalent to nn.Linear's x @ W.T + b)."""
    B, Tq, D = x_q.shape
    _, S, _ = x_kv.shape
    assert D % n_heads == 0, "d_token must be a multiple of n_heads"
    dh = D // n_heads

    # TODO(synk): Linformer key/value compression not implemented (None in the
    # default forward of the PyTorch module).
    # TODO(synk): n_heads == 1 (module has no W_out mixing layer) not
    # specialized; pass wo=identity / bo=0 for that case.

    # Head-major weight layout built host-side (free layout plumbing): the
    # kernel never slices the feature/lane dimension itself.
    wq_h = params["wq"].reshape(D, n_heads, dh).transpose(1, 0, 2)   # (H, D, dh)
    wk_h = params["wk"].reshape(D, n_heads, dh).transpose(1, 0, 2)
    wv_h = params["wv"].reshape(D, n_heads, dh).transpose(1, 0, 2)
    wo_h = params["wo"].reshape(n_heads, dh, D)                      # (H, dh, D)
    bq_h = params["bq"].reshape(n_heads, 1, dh)
    bk_h = params["bk"].reshape(n_heads, 1, dh)
    bv_h = params["bv"].reshape(n_heads, 1, dh)
    bo = params["bo"].reshape(1, D)

    if batch_block is None:
        batch_block = _pick_batch_block(B, max(Tq, S))
    bt = batch_block
    assert B % bt == 0, "batch_block must divide the batch size"
    grid = (B // bt, n_heads)

    in_specs = [
        pl.BlockSpec((bt, Tq, D), lambda b, h: (b, 0, 0)),    # x_q
        pl.BlockSpec((bt, S, D), lambda b, h: (b, 0, 0)),     # x_kv
        pl.BlockSpec((1, D, dh), lambda b, h: (h, 0, 0)),     # W_q, head h
        pl.BlockSpec((1, D, dh), lambda b, h: (h, 0, 0)),     # W_k, head h
        pl.BlockSpec((1, D, dh), lambda b, h: (h, 0, 0)),     # W_v, head h
        pl.BlockSpec((1, dh, D), lambda b, h: (h, 0, 0)),     # W_out rows, head h
        pl.BlockSpec((1, 1, dh), lambda b, h: (h, 0, 0)),     # b_q, head h
        pl.BlockSpec((1, 1, dh), lambda b, h: (h, 0, 0)),     # b_k, head h
        pl.BlockSpec((1, 1, dh), lambda b, h: (h, 0, 0)),     # b_v, head h
        pl.BlockSpec((1, D), lambda b, h: (0, 0)),            # b_out
    ]

    out_specs = [pl.BlockSpec((bt, Tq, D), lambda b, h: (b, 0, 0))]
    out_shape = [jax.ShapeDtypeStruct((B, Tq, D), x_q.dtype)]
    if return_stats:
        stat_spec = pl.BlockSpec((bt, 1, Tq, S), lambda b, h: (b, h, 0, 0))
        out_specs += [stat_spec, stat_spec]
        out_shape += [jax.ShapeDtypeStruct((B, n_heads, Tq, S), stats_dtype)] * 2

    kernel = functools.partial(_mha_kernel, d_head=dh, with_stats=return_stats)

    results = pl.pallas_call(
        kernel,
        grid=grid,
        in_specs=in_specs,
        out_specs=out_specs,
        out_shape=out_shape,
        scratch_shapes=[pltpu.VMEM((bt * Tq, D), jnp.float32)],
        compiler_params=pltpu.CompilerParams(
            dimension_semantics=("parallel", "arbitrary")),
    )(x_q, x_kv, wq_h, wk_h, wv_h, wo_h, bq_h, bk_h, bv_h, bo)

    if return_stats:
        out, logits, probs = results
        stats = {
            "attention_logits": logits.reshape(B * n_heads, Tq, S),
            "attention_probs": probs.reshape(B * n_heads, Tq, S),
        }
    else:
        (out,) = results
        stats = {}
    return out, stats


def _reference(x_q, x_kv, params, *, n_heads: int):
    """Pure-JAX reference mirroring the PyTorch forward (for validation)."""
    B, Tq, D = x_q.shape
    S = x_kv.shape[1]
    dh = D // n_heads
    q = x_q @ params["wq"] + params["bq"]
    k = x_kv @ params["wk"] + params["bk"]
    v = x_kv @ params["wv"] + params["bv"]

    def split(t, T):
        return t.reshape(B, T, n_heads, dh).transpose(0, 2, 1, 3).reshape(B * n_heads, T, dh)

    qh, kh, vh = split(q, Tq), split(k, S), split(v, S)
    logits = qh @ kh.transpose(0, 2, 1) / math.sqrt(dh)
    probs = jax.nn.softmax(logits, axis=-1)
    x = probs @ vh
    x = x.reshape(B, n_heads, Tq, dh).transpose(0, 2, 1, 3).reshape(B, Tq, D)
    x = x @ params["wo"] + params["bo"]
    return x, logits, probs


if __name__ == "__main__":
    B, T, D, H = 2, 8, 32, 4  # batch, n_tokens, d_token, n_heads

    key = jax.random.PRNGKey(0)
    keys = jax.random.split(key, 10)

    x_q = jax.random.normal(keys[0], (B, T, D), dtype=jnp.float32)
    x_kv = jax.random.normal(keys[1], (B, T, D), dtype=jnp.float32)

    # Deterministic parameter init (kaiming-like scale); weights in (d_in, d_out)
    # layout.  Biases are zero-initialized in the PyTorch module; non-zero
    # values are used here so the bias path is actually exercised.
    scale = 1.0 / math.sqrt(D)
    params = {
        "wq": jax.random.normal(keys[2], (D, D), jnp.float32) * scale,
        "wk": jax.random.normal(keys[3], (D, D), jnp.float32) * scale,
        "wv": jax.random.normal(keys[4], (D, D), jnp.float32) * scale,
        "wo": jax.random.normal(keys[5], (D, D), jnp.float32) * scale,
        "bq": jax.random.normal(keys[6], (D,), jnp.float32) * 0.1,
        "bk": jax.random.normal(keys[7], (D,), jnp.float32) * 0.1,
        "bv": jax.random.normal(keys[8], (D,), jnp.float32) * 0.1,
        "bo": jax.random.normal(keys[9], (D,), jnp.float32) * 0.1,
    }

    out, stats = multihead_attention(x_q, x_kv, params, n_heads=H)
    jax.block_until_ready(out)
    jax.block_until_ready(stats["attention_probs"])

    # Stats-free fast path (skips the (B,H,Tq,S) HBM writeback entirely).
    out_fast, _ = multihead_attention(x_q, x_kv, params, n_heads=H,
                                      return_stats=False)
    jax.block_until_ready(out_fast)

    # Validate against the pure-JAX reference.
    ref_out, ref_logits, ref_probs = _reference(x_q, x_kv, params, n_heads=H)
    assert jnp.allclose(out, ref_out, atol=2e-3, rtol=2e-3), \
        float(jnp.max(jnp.abs(out - ref_out)))
    assert jnp.allclose(out_fast, ref_out, atol=2e-3, rtol=2e-3)
    assert jnp.allclose(stats["attention_logits"], ref_logits, atol=1e-3, rtol=1e-3)
    assert jnp.allclose(stats["attention_probs"], ref_probs, atol=1e-3, rtol=1e-3)

    print("KERNEL_OK")
</pallas_src>

<mosaic_0001>
module attributes {stable_mosaic.version = 11 : i64} {
  func.func @_mha_kernel(%arg0: i32, %arg1: i32, %arg2: memref<1x8x32xf32, #tpu.memory_space<vmem>>, %arg3: memref<1x8x32xf32, #tpu.memory_space<vmem>>, %arg4: memref<1x32x8xf32, #tpu.memory_space<vmem>>, %arg5: memref<1x32x8xf32, #tpu.memory_space<vmem>>, %arg6: memref<1x32x8xf32, #tpu.memory_space<vmem>>, %arg7: memref<1x8x32xf32, #tpu.memory_space<vmem>>, %arg8: memref<1x1x8xf32, #tpu.memory_space<vmem>>, %arg9: memref<1x1x8xf32, #tpu.memory_space<vmem>>, %arg10: memref<1x1x8xf32, #tpu.memory_space<vmem>>, %arg11: memref<1x32xf32, #tpu.memory_space<vmem>>, %arg12: memref<1x8x32xf32, #tpu.memory_space<vmem>>, %arg13: memref<1x1x8x8xf32, #tpu.memory_space<vmem>>, %arg14: memref<1x1x8x8xf32, #tpu.memory_space<vmem>>, %arg15: memref<8x32xf32, #tpu.memory_space<vmem>>) attributes {dimension_semantics = [#tpu.dimension_semantics<parallel>, #tpu.dimension_semantics<arbitrary>], iteration_bounds = array<i64: 2, 4>, scalar_prefetch = 0 : i64, scratch_operands = 1 : i64, tpu.core_type = #tpu.core_type<tc>, window_params = [{transform_indices = @transform_0, window_bounds = array<i64: 1, 8, 32>}, {transform_indices = @transform_1, window_bounds = array<i64: 1, 8, 32>}, {transform_indices = @transform_2, window_bounds = array<i64: 1, 32, 8>}, {transform_indices = @transform_3, window_bounds = array<i64: 1, 32, 8>}, {transform_indices = @transform_4, window_bounds = array<i64: 1, 32, 8>}, {transform_indices = @transform_5, window_bounds = array<i64: 1, 8, 32>}, {transform_indices = @transform_6, window_bounds = array<i64: 1, 1, 8>}, {transform_indices = @transform_7, window_bounds = array<i64: 1, 1, 8>}, {transform_indices = @transform_8, window_bounds = array<i64: 1, 1, 8>}, {pipeline_mode = #tpu.pipeline_mode<synchronous>, transform_indices = @transform_9, window_bounds = array<i64: 1, 32>}, {transform_indices = @transform_10, window_bounds = array<i64: 1, 8, 32>}, {transform_indices = @transform_11, window_bounds = array<i64: 1, 1, 8, 8>}, {transform_indices = @transform_12, window_bounds = array<i64: 1, 1, 8, 8>}]} {
    %c0 = arith.constant 0 : index
    %c0_0 = arith.constant 0 : index
    %c0_1 = arith.constant 0 : index
    %0 = vector.load %arg2[%c0, %c0_0, %c0_1] : memref<1x8x32xf32, #tpu.memory_space<vmem>>, vector<1x8x32xf32>
    %1 = vector.shape_cast %0 : vector<1x8x32xf32> to vector<8x32xf32>
    %c0_2 = arith.constant 0 : index
    %c0_3 = arith.constant 0 : index
    %c0_4 = arith.constant 0 : index
    %2 = vector.load %arg3[%c0_2, %c0_3, %c0_4] : memref<1x8x32xf32, #tpu.memory_space<vmem>>, vector<1x8x32xf32>
    %3 = vector.shape_cast %2 : vector<1x8x32xf32> to vector<8x32xf32>
    %c0_5 = arith.constant 0 : index
    %c0_6 = arith.constant 0 : index
    %c0_7 = arith.constant 0 : index
    %4 = vector.load %arg4[%c0_5, %c0_6, %c0_7] : memref<1x32x8xf32, #tpu.memory_space<vmem>>, vector<1x32x8xf32>
    %5 = vector.shape_cast %4 : vector<1x32x8xf32> to vector<32x8xf32>
    %c0_8 = arith.constant 0 : index
    %c0_9 = arith.constant 0 : index
    %c0_10 = arith.constant 0 : index
    %6 = vector.load %arg5[%c0_8, %c0_9, %c0_10] : memref<1x32x8xf32, #tpu.memory_space<vmem>>, vector<1x32x8xf32>
    %7 = vector.shape_cast %6 : vector<1x32x8xf32> to vector<32x8xf32>
    %c0_11 = arith.constant 0 : index
    %c0_12 = arith.constant 0 : index
    %c0_13 = arith.constant 0 : index
    %8 = vector.load %arg6[%c0_11, %c0_12, %c0_13] : memref<1x32x8xf32, #tpu.memory_space<vmem>>, vector<1x32x8xf32>
    %9 = vector.shape_cast %8 : vector<1x32x8xf32> to vector<32x8xf32>
    %c0_14 = arith.constant 0 : index
    %c0_15 = arith.constant 0 : index
    %c0_16 = arith.constant 0 : index
    %10 = vector.load %arg7[%c0_14, %c0_15, %c0_16] : memref<1x8x32xf32, #tpu.memory_space<vmem>>, vector<1x8x32xf32>
    %11 = vector.shape_cast %10 : vector<1x8x32xf32> to vector<8x32xf32>
    %c0_17 = arith.constant 0 : index
    %c0_18 = arith.constant 0 : index
    %c0_19 = arith.constant 0 : index
    %12 = vector.load %arg8[%c0_17, %c0_18, %c0_19] : memref<1x1x8xf32, #tpu.memory_space<vmem>>, vector<1x1x8xf32>
    %13 = vector.shape_cast %12 : vector<1x1x8xf32> to vector<1x8xf32>
    %c0_20 = arith.constant 0 : index
    %c0_21 = arith.constant 0 : index
    %c0_22 = arith.constant 0 : index
    %14 = vector.load %arg9[%c0_20, %c0_21, %c0_22] : memref<1x1x8xf32, #tpu.memory_space<vmem>>, vector<1x1x8xf32>
    %15 = vector.shape_cast %14 : vector<1x1x8xf32> to vector<1x8xf32>
    %c0_23 = arith.constant 0 : index
    %c0_24 = arith.constant 0 : index
    %c0_25 = arith.constant 0 : index
    %16 = vector.load %arg10[%c0_23, %c0_24, %c0_25] : memref<1x1x8xf32, #tpu.memory_space<vmem>>, vector<1x1x8xf32>
    %17 = vector.shape_cast %16 : vector<1x1x8xf32> to vector<1x8xf32>
    %cst = arith.constant dense<0.000000e+00> : vector<8x8xf32>
    %18 = tpu.matmul %1, %5, %cst {dimension_numbers = #tpu.dot_dimension_numbers<[1], [0], [0], [1], [0, 0, 1, 1], [], []>} : vector<8x32xf32>, vector<32x8xf32>, vector<8x8xf32> -> vector<8x8xf32>
    %19 = vector.broadcast %13 : vector<1x8xf32> to vector<8x8xf32>
    %20 = arith.addf %18, %19 : vector<8x8xf32>
    %cst_26 = arith.constant 0.353553385 : f32
    %21 = vector.broadcast %cst_26 : f32 to vector<8x8xf32>
    %22 = arith.mulf %20, %21 : vector<8x8xf32>
    %cst_27 = arith.constant dense<0.000000e+00> : vector<8x8xf32>
    %23 = tpu.matmul %3, %7, %cst_27 {dimension_numbers = #tpu.dot_dimension_numbers<[1], [0], [0], [1], [0, 0, 1, 1], [], []>} : vector<8x32xf32>, vector<32x8xf32>, vector<8x8xf32> -> vector<8x8xf32>
    %24 = vector.broadcast %15 : vector<1x8xf32> to vector<8x8xf32>
    %25 = arith.addf %23, %24 : vector<8x8xf32>
    %cst_28 = arith.constant dense<0.000000e+00> : vector<8x8xf32>
    %26 = tpu.matmul %3, %9, %cst_28 {dimension_numbers = #tpu.dot_dimension_numbers<[1], [0], [0], [1], [0, 0, 1, 1], [], []>} : vector<8x32xf32>, vector<32x8xf32>, vector<8x8xf32> -> vector<8x8xf32>
    %27 = vector.broadcast %17 : vector<1x8xf32> to vector<8x8xf32>
    %28 = arith.addf %26, %27 : vector<8x8xf32>
    %29 = vector.shape_cast %22 : vector<8x8xf32> to vector<1x8x8xf32>
    %30 = vector.shape_cast %25 : vector<8x8xf32> to vector<1x8x8xf32>
    %31 = vector.shape_cast %28 : vector<8x8xf32> to vector<1x8x8xf32>
    %cst_29 = arith.constant dense<0.000000e+00> : vector<1x8x8xf32>
    %32 = tpu.matmul %29, %30, %cst_29 {dimension_numbers = #tpu.dot_dimension_numbers<[2], [2], [1], [1], [0, 0, 0, 1, 1, 1], [0], [0]>} : vector<1x8x8xf32>, vector<1x8x8xf32>, vector<1x8x8xf32> -> vector<1x8x8xf32>
    %cst_30 = arith.constant dense<0xFF800000> : vector<1x8xf32>
    %33 = vector.multi_reduction <maximumf>, %32, %cst_30 [2] : vector<1x8x8xf32> to vector<1x8xf32>
    %34 = vector.shape_cast %33 : vector<1x8xf32> to vector<1x8x1xf32>
    %35 = vector.broadcast %34 : vector<1x8x1xf32> to vector<1x8x8xf32>
    %36 = arith.subf %32, %35 : vector<1x8x8xf32>
    %37 = math.exp %36 : vector<1x8x8xf32>
    %cst_31 = arith.constant dense<0.000000e+00> : vector<1x8xf32>
    %38 = vector.multi_reduction <add>, %37, %cst_31 [2] : vector<1x8x8xf32> to vector<1x8xf32>
    %39 = vector.shape_cast %38 : vector<1x8xf32> to vector<1x8x1xf32>
    %40 = vector.broadcast %39 : vector<1x8x1xf32> to vector<1x8x8xf32>
    %41 = arith.divf %37, %40 : vector<1x8x8xf32>
    %42 = vector.shape_cast %32 : vector<1x8x8xf32> to vector<1x1x8x8xf32>
    %c0_32 = arith.constant 0 : index
    %c0_33 = arith.constant 0 : index
    %c0_34 = arith.constant 0 : index
    %c0_35 = arith.constant 0 : index
    %43 = vector.load %arg13[%c0_32, %c0_33, %c0_34, %c0_35] : memref<1x1x8x8xf32, #tpu.memory_space<vmem>>, vector<1x1x8x8xf32>
    tpu.vector_store %arg13[%c0_32, %c0_33, %c0_34, %c0_35], %42 {strides = array<i32>} : memref<1x1x8x8xf32, #tpu.memory_space<vmem>>, vector<1x1x8x8xf32>,
    %44 = vector.shape_cast %41 : vector<1x8x8xf32> to vector<1x1x8x8xf32>
    %c0_36 = arith.constant 0 : index
    %c0_37 = arith.constant 0 : index
    %c0_38 = arith.constant 0 : index
    %c0_39 = arith.constant 0 : index
    %45 = vector.load %arg14[%c0_36, %c0_37, %c0_38, %c0_39] : memref<1x1x8x8xf32, #tpu.memory_space<vmem>>, vector<1x1x8x8xf32>
    tpu.vector_store %arg14[%c0_36, %c0_37, %c0_38, %c0_39], %44 {strides = array<i32>} : memref<1x1x8x8xf32, #tpu.memory_space<vmem>>, vector<1x1x8x8xf32>,
    %cst_40 = arith.constant dense<0.000000e+00> : vector<1x8x8xf32>
    %46 = tpu.matmul %41, %31, %cst_40 {dimension_numbers = #tpu.dot_dimension_numbers<[2], [1], [1], [2], [0, 0, 0, 1, 1, 2], [0], [0]>} : vector<1x8x8xf32>, vector<1x8x8xf32>, vector<1x8x8xf32> -> vector<1x8x8xf32>
    %47 = vector.shape_cast %46 : vector<1x8x8xf32> to vector<8x8xf32>
    %cst_41 = arith.constant dense<0.000000e+00> : vector<8x32xf32>
    %48 = tpu.matmul %47, %11, %cst_41 {dimension_numbers = #tpu.dot_dimension_numbers<[1], [0], [0], [1], [0, 0, 1, 1], [], []>} : vector<8x8xf32>, vector<8x32xf32>, vector<8x32xf32> -> vector<8x32xf32>
    %c0_i32 = arith.constant 0 : i32
    %49 = arith.cmpi eq, %arg1, %c0_i32 : i32
    %50 = arith.extui %49 : i1 to i32
    %c0_i32_42 = arith.constant 0 : i32
    %51 = arith.cmpi ne, %50, %c0_i32_42 : i32
    scf.if %51 {
      %cst_54 = arith.constant 0.000000e+00 : f32
      %61 = vector.broadcast %cst_54 : f32 to vector<8x32xf32>
      %c0_55 = arith.constant 0 : index
      %c0_56 = arith.constant 0 : index
      %62 = vector.load %arg15[%c0_55, %c0_56] : memref<8x32xf32, #tpu.memory_space<vmem>>, vector<8x32xf32>
      tpu.vector_store %arg15[%c0_55, %c0_56], %61 {strides = array<i32>} : memref<8x32xf32, #tpu.memory_space<vmem>>, vector<8x32xf32>,
    } else {
    }
    %c0_43 = arith.constant 0 : index
    %c0_44 = arith.constant 0 : index
    %52 = vector.load %arg15[%c0_43, %c0_44] : memref<8x32xf32, #tpu.memory_space<vmem>>, vector<8x32xf32>
    %53 = arith.addf %52, %48 : vector<8x32xf32>
    %c0_45 = arith.constant 0 : index
    %c0_46 = arith.constant 0 : index
    %54 = vector.load %arg15[%c0_45, %c0_46] : memref<8x32xf32, #tpu.memory_space<vmem>>, vector<8x32xf32>
    tpu.vector_store %arg15[%c0_45, %c0_46], %53 {strides = array<i32>} : memref<8x32xf32, #tpu.memory_space<vmem>>, vector<8x32xf32>,
    %c0_47 = arith.constant 0 : index
    %c0_48 = arith.constant 0 : index
    %55 = vector.load %arg15[%c0_47, %c0_48] : memref<8x32xf32, #tpu.memory_space<vmem>>, vector<8x32xf32>
    %c0_49 = arith.constant 0 : index
    %c0_50 = arith.constant 0 : index
    %56 = vector.load %arg11[%c0_49, %c0_50] : memref<1x32xf32, #tpu.memory_space<vmem>>, vector<1x32xf32>
    %57 = vector.broadcast %56 : vector<1x32xf32> to vector<8x32xf32>
    %58 = arith.addf %55, %57 : vector<8x32xf32>
    %59 = vector.shape_cast %58 : vector<8x32xf32> to vector<1x8x32xf32>
    %c0_51 = arith.constant 0 : index
    %c0_52 = arith.constant 0 : index
    %c0_53 = arith.constant 0 : index
    %60 = vector.load %arg12[%c0_51, %c0_52, %c0_53] : memref<1x8x32xf32, #tpu.memory_space<vmem>>, vector<1x8x32xf32>
    tpu.vector_store %arg12[%c0_51, %c0_52, %c0_53], %59 {strides = array<i32>} : memref<1x8x32xf32, #tpu.memory_space<vmem>>, vector<1x8x32xf32>,
    return
  }
  func.func @transform_0(%arg0: i32, %arg1: i32) -> (i32, i32, i32) {
    %c0_i32 = arith.constant 0 : i32
    %c0_i32_0 = arith.constant 0 : i32
    %c0_i32_1 = arith.constant 0 : i32
    return %arg0, %c0_i32, %c0_i32_0 : i32, i32, i32
  }
  func.func @transform_1(%arg0: i32, %arg1: i32) -> (i32, i32, i32) {
    %c0_i32 = arith.constant 0 : i32
    %c0_i32_0 = arith.constant 0 : i32
    %c0_i32_1 = arith.constant 0 : i32
    return %arg0, %c0_i32, %c0_i32_0 : i32, i32, i32
  }
  func.func @transform_2(%arg0: i32, %arg1: i32) -> (i32, i32, i32) {
    %c0_i32 = arith.constant 0 : i32
    %c0_i32_0 = arith.constant 0 : i32
    %c0_i32_1 = arith.constant 0 : i32
    return %arg1, %c0_i32, %c0_i32_0 : i32, i32, i32
  }
  func.func @transform_3(%arg0: i32, %arg1: i32) -> (i32, i32, i32) {
    %c0_i32 = arith.constant 0 : i32
    %c0_i32_0 = arith.constant 0 : i32
    %c0_i32_1 = arith.constant 0 : i32
    return %arg1, %c0_i32, %c0_i32_0 : i32, i32, i32
  }
  func.func @transform_4(%arg0: i32, %arg1: i32) -> (i32, i32, i32) {
    %c0_i32 = arith.constant 0 : i32
    %c0_i32_0 = arith.constant 0 : i32
    %c0_i32_1 = arith.constant 0 : i32
    return %arg1, %c0_i32, %c0_i32_0 : i32, i32, i32
  }
  func.func @transform_5(%arg0: i32, %arg1: i32) -> (i32, i32, i32) {
    %c0_i32 = arith.constant 0 : i32
    %c0_i32_0 = arith.constant 0 : i32
    %c0_i32_1 = arith.constant 0 : i32
    return %arg1, %c0_i32, %c0_i32_0 : i32, i32, i32
  }
  func.func @transform_6(%arg0: i32, %arg1: i32) -> (i32, i32, i32) {
    %c0_i32 = arith.constant 0 : i32
    %c0_i32_0 = arith.constant 0 : i32
    %c0_i32_1 = arith.constant 0 : i32
    return %arg1, %c0_i32, %c0_i32_0 : i32, i32, i32
  }
  func.func @transform_7(%arg0: i32, %arg1: i32) -> (i32, i32, i32) {
    %c0_i32 = arith.constant 0 : i32
    %c0_i32_0 = arith.constant 0 : i32
    %c0_i32_1 = arith.constant 0 : i32
    return %arg1, %c0_i32, %c0_i32_0 : i32, i32, i32
  }
  func.func @transform_8(%arg0: i32, %arg1: i32) -> (i32, i32, i32) {
    %c0_i32 = arith.constant 0 : i32
    %c0_i32_0 = arith.constant 0 : i32
    %c0_i32_1 = arith.constant 0 : i32
    return %arg1, %c0_i32, %c0_i32_0 : i32, i32, i32
  }
  func.func @transform_9(%arg0: i32, %arg1: i32) -> (i32, i32) {
    %c0_i32 = arith.constant 0 : i32
    %c0_i32_0 = arith.constant 0 : i32
    %c0_i32_1 = arith.constant 0 : i32
    return %c0_i32, %c0_i32_0 : i32, i32
  }
  func.func @transform_10(%arg0: i32, %arg1: i32) -> (i32, i32, i32) {
    %c0_i32 = arith.constant 0 : i32
    %c0_i32_0 = arith.constant 0 : i32
    %c0_i32_1 = arith.constant 0 : i32
    return %arg0, %c0_i32, %c0_i32_0 : i32, i32, i32
  }
  func.func @transform_11(%arg0: i32, %arg1: i32) -> (i32, i32, i32, i32) {
    %c0_i32 = arith.constant 0 : i32
    %c0_i32_0 = arith.constant 0 : i32
    %c0_i32_1 = arith.constant 0 : i32
    return %arg0, %arg1, %c0_i32, %c0_i32_0 : i32, i32, i32, i32
  }
  func.func @transform_12(%arg0: i32, %arg1: i32) -> (i32, i32, i32, i32) {
    %c0_i32 = arith.constant 0 : i32
    %c0_i32_0 = arith.constant 0 : i32
    %c0_i32_1 = arith.constant 0 : i32
    return %arg0, %arg1, %c0_i32, %c0_i32_0 : i32, i32, i32, i32
  }
}

</mosaic_0001>

<bundles_post_ra>
// kernel: tpu_custom_call.1
= control target key start
LH: loop header
LB: loop body
LE: loop exit
PB: predicated region body
PF: predicated region fallthrough
CT: control target
= control target key end

     0   :  { %s1780_s0 = inlined_call_operand.vmem [shape: f32[2,8,32], index: 0, kind: input, shape index: {}]   ;;  %s1781_s1 = inlined_call_operand.vmem [shape: f32[2,8,32], index: 1, kind: input, shape index: {}]   ;;  %s1782_s2 = inlined_call_operand.vmem [shape: f32[4,32,8], index: 2, kind: input, shape index: {}]   ;;  %s1783_s3 = inlined_call_operand.vmem [shape: f32[4,32,8], index: 3, kind: input, shape index: {}]   ;;  %s1784_s4 = inlined_call_operand.vmem [shape: f32[4,32,8], index: 4, kind: input, shape index: {}]   ;;  %s1785_s5 = inlined_call_operand.vmem [shape: f32[4,8,32], index: 5, kind: input, shape index: {}]   ;;  %s1786_s6 = inlined_call_operand.vmem [shape: f32[4,1,8], index: 6, kind: input, shape index: {}]   ;;  %s1787_s7 = inlined_call_operand.vmem [shape: f32[4,1,8], index: 7, kind: input, shape index: {}]   ;;  %s1788_s8 = inlined_call_operand.vmem [shape: f32[4,1,8], index: 8, kind: input, shape index: {}]   ;;  %s1789_s9 = inlined_call_operand.vmem [shape: f32[1,32], index: 9, kind: input, shape index: {}]   ;;  %s1790_s10 = inlined_call_operand.hbm [shape: f32[2,8,32], index: 10, kind: output, shape index: {0}]   ;;  %s1791_s11 = inlined_call_operand.hbm [shape: f32[2,4,8,8], index: 11, kind: output, shape index: {1}]   ;;  %s1792_s12 = inlined_call_operand.hbm [shape: f32[2,4,8,8], index: 12, kind: output, shape index: {2}]  }
   0x1   :  { %1809 = sst [smem:[#allocation20_spill]] %s1780_s0 }
   0x2   :  { %1810 = sst [smem:[#allocation21_spill]] %s1781_s1 }
   0x3   :  { %1811 = sst [smem:[#allocation22_spill]] %s1782_s2 }
   0x4   :  { %1812 = sst [smem:[#allocation23_spill]] %s1783_s3 }
   0x5   :  { %1813 = sst [smem:[#allocation24_spill]] %s1784_s4 }
   0x6   :  { %1814 = sst [smem:[#allocation25_spill]] %s1785_s5 }
   0x7   :  { %1815 = sst [smem:[#allocation26_spill]] %s1787_s7 }
   0x8   :  { %1816 = sst [smem:[#allocation27_spill]] %s1789_s9 }
   0x9   :  { %1817 = sst [smem:[#allocation28_spill]] %s1790_s10 }
   0xa   :  { %1818 = sst [smem:[#allocation29_spill]] %s1791_s11 }
   0xb   :  { %1819 = sst [smem:[#allocation30_spill]] %s1792_s12 }
   0xc   :  { %18 = vsyncpa [#allocation4], 0 }
   0xd   :  { %20 = vsyncpa [#allocation4 + $0x1], 0 }
   0xe   :  { %21 = vsyncpa [#allocation6], 0 }
   0xf   :  { %23 = vsyncpa [#allocation6 + $0x1], 0  ;;  %s1468_s21 = smov 0   ;;  %s1470_s22 = smov 0  }
  0x10   :  { %s1472_s23 = smov 0   ;;  %s1474_s24 = smov 0  }
  0x11   :  { %s1476_s25 = smov 0   ;;  %s1478_s26 = smov 0  }
  0x12   :  { %s1480_s27 = smov 0   ;;  %s1482_s28 = smov 0  }
  0x13   :  { %s1484_s29 = smov 0   ;;  %s1486_s30 = smov 0  }
  0x14   :  { %s1488_s13 = smov 0  }
  0x15 LB: > { %1820 = sst [smem:[#allocation10_spill]] %s1368_s23  ;;  %s1793_s14 = sadd.s32 4294967295, %s1400_s13   ;;  %s1400_s13 = sphi %s1488_s13, %s29_s13   ;;  %s1396_s30 = sphi %s1486_s30, %s1868_s30   ;;  %s1392_s29 = sphi %s1484_s29, %s1861_s29   ;;  %s1388_s28 = sphi %s1482_s28, %s1867_s28   ;;  %s1384_s27 = sphi %s1480_s27, %s1859_s27   ;;  %s1380_s26 = sphi %s1478_s26, %s1858_s26   ;;  %s1376_s25 = sphi %s1476_s25, %s1866_s25   ;;  %s1372_s24 = sphi %s1474_s24, %s1865_s24   ;;  %s1368_s23 = sphi %s1472_s23, %s1856_s23   ;;  %s1364_s22 = sphi %s1470_s22, %s1864_s22   ;;  %s1360_s21 = sphi %s1468_s21, %s1863_s21  }
  0x16   : > { %1821 = sst [smem:[#allocation11_spill]] %s1372_s24  ;;  %s1798_s15 = sadd.s32 4294967294, %s1400_s13  }
  0x17   : > { %1822 = sst [smem:[#allocation12_spill]] %s1380_s26  ;;  %s38_s16 = sadd.s32 1, %s1392_s29 }
  0x18   : > { %1823 = sst [smem:[#allocation13_spill]] %s1392_s29  ;;  %s41_s17 = sadd.s32 1, %s1396_s30 }
  0x19   : > { %1824 = sst [smem:[#allocation14_spill]] %s1396_s30  ;;  %p39_p0 = scmp.ge.s32.totalorder %s38_s16, 4 }
  0x1a   : > { %s303_s18 = sadd.s32 1, %s1380_s26  ;;  %p313_p1 = scmp.ne.s32.totalorder %s1380_s26, %s1376_s25 }
  0x1b   : > { %p1532_p2 = scmp.eq.s32.totalorder %s1793_s14, 7  ;;  %s1870_s16 = smov (%p39_p0, %s38_s16), 0 }
  0x1c   : > { %1826 = sst [smem:[#allocation15_spill]] %s1870_s16  ;;  %s1872_s17 = smov (!%p39_p0, %s41_s17), %s1396_s30 }
  0x1d   : > { %p1541_p3 = por %p1532_p2, %p313_p1  ;;  %p319_p4 = scmp.ne.s32.totalorder %s1376_s25, %s1372_s24 }
  0x1e   : > { %p43_p5 = scmp.ge.s32.totalorder %s1872_s17, 2  ;;  %p1549_p6 = scmp.eq.s32.totalorder %s1798_s15, 7 }
  0x1f   : > { %s1827_s20 = scalar_select %p1541_p3, 1, 0 }
  0x20   : > { %s327_s12 = ssub.s32 %s1392_s29, %s1870_s16  ;;  %s331_s9 = sadd.s32 1, %s1368_s23 }
  0x21   : > { %1828 = sst [smem:[#allocation16_spill]] %s1827_s20  ;;  %s1874_s17 = smov (%p43_p5, %s1872_s17), 0 }
  0x22   : > { %1830 = sst [smem:[#allocation17_spill]] %s1874_s17  ;;  %p1560_p7 = por %p1549_p6, %p319_p4 }
  0x23   : > { %p341_p8 = scmp.ne.s32.totalorder %s1368_s23, %s1364_s22  ;;  %s300_s24 = ssub.s32 %s1396_s30, %s1874_s17 }
  0x24   : > { %p347_p9 = scmp.ne.s32.totalorder %s1364_s22, %s1360_s21  ;;  %p301_p10 = scmp.eq.s32.totalorder %s300_s24, 0 }
  0x25   : > { %s328_s15 = sor.u32 %s327_s12, %s300_s24  ;;  %p1572_p12 = por %p341_p8, %p1532_p2 }
  0x26   : > { %p329_p11 = scmp.eq.s32.totalorder %s328_s15, 0  ;;  %p1584_p13 = por %p347_p9, %p1549_p6 }
  0x27   : > { %s1577_s16 = scalar_select %p301_p10, %s1380_s26, %s303_s18  }
  0x28   : > { %s1580_s29 = scalar_select %p329_p11, %s1368_s23, %s331_s9  }
  0x29   : > { %1833 = sst [smem:[#allocation18_spill]] %s1577_s16  ;;  %p1074_p0 = scmp.ge.s32.totalorder %s1400_s13, 1 }
  0x2a   : > { %1834 = sst [smem:[#allocation19_spill]] %s1580_s29  ;;  %p460_p1 = scmp.lt.s32.totalorder %s1400_s13, 9 }
  0x2c   : > { %p461_p4 = pnand %p1074_p0, %p460_p1 }
  0x2d   : > { %p551_p2 = scmp.lt.s32.totalorder (!%p461_p4), %s1384_s27, 3  ;;  %s1805_s12 = sand.u32 (!%p461_p4), 1, %s1376_s25  }
  0x2e   : > { %464 = sbr.rel (%p461_p4) target bundleno = 906 (0x38a), region = 60  ;;  %s1594_s9 = sshll.u32 (!%p461_p4), %s1805_s12, 3 }
  0x2f   : > { %p543_p5 = scmp.lt.s32.totalorder (!%p461_p4), %s1388_s28, 1  ;;  %s1836_s7 = sld [smem:[#allocation26_spill]] (!%p461_p4) }
  0x30   : > { %s1837_s3 = sld [smem:[#allocation23_spill]] (!%p461_p4)  ;;  %p1094_p6 = scmp.ne.s32.totalorder (!%p461_p4), %s1384_s27, 0 }
  0x31   : > { %s1838_s2 = sld [smem:[#allocation22_spill]] (!%p461_p4) }
  0x32   : > { %s1839_s1 = sld [smem:[#allocation21_spill]] (!%p461_p4) }
  0x33   : > { %s1598_s21 = scalar_select %p551_p2, %s1384_s27, 3  ;;  %vm600_vm0 = vcmask 261120   ;;  %vm674_vm1 = vcmask 64512  }
  0x34   : > { %s544_s29 = scalar_select %p543_p5, %s1388_s28, 1 }
  0x35   : > { %s1601_s24 = sshll.u32 %s1598_s21, 5  ;;  %s575_s18 = scalar_lea.vmem %s1836_s7, %s1598_s21 }
  0x36   : > { %s560_s30 = scalar_lea.vmem %s1837_s3, %s1601_s24  ;;  %s1078_s14 = sshll.u32 %s544_s29, 3  ;;  %v1214_v10 = vld [vmem:[%s575_s18] ss:$0 sm:$0xff] }
  0x37   : > { %s555_s26 = scalar_lea.vmem %s1838_s2, %s1601_s24  ;;  %v588_v0 = vld [vmem:[%s560_s30 + $0x18] sm:$0xff]  ;;  %v587_v2 = vld [vmem:[%s560_s30 + $0x10] sm:$0xff]  ;;  %v586_v4 = vld [vmem:[%s560_s30 + $0x8] sm:$0xff]  ;;  %s1840_s0 = sld [smem:[#allocation20_spill]] }
  0x38   : > { %v584_v1 = vld [vmem:[%s555_s26 + $0x18] sm:$0xff]  ;;  %643 = vmatpush.msra.mxu1 %v588_v0  ;;  %v583_v3 = vld [vmem:[%s555_s26 + $0x10] sm:$0xff]  ;;  %v582_v5 = vld [vmem:[%s555_s26 + $0x8] sm:$0xff]  ;;  %s550_s19 = scalar_lea.vmem %s1839_s1, %s1078_s14  ;;  %s572_s23 = scalar_lea.vmem %s1786_s6, %s1598_s21 }
  0x39   : > { %616 = vmatpush.msra.mxu0 %v584_v1  ;;  %v585_v6 = vld [vmem:[%s560_s30] sm:$0xff]  ;;  %s1841_s4 = sld [smem:[#allocation24_spill]]  ;;  %s578_s18 = scalar_lea.vmem %s1788_s8, %s1598_s21 }
  0x3a   : > { %644 = vmatpush.msra.mxu1 %v587_v2  ;;  %v581_v7 = vld [vmem:[%s555_s26] sm:$0xff]  ;;  %s533_s26 = sand.u32 1, %s1364_s22   ;;  %s1842_s5 = sld [smem:[#allocation25_spill]] }
  0x3b   : > { %617 = vmatpush.msra.mxu0 %v583_v3  ;;  %v580_v8 = vld [vmem:[%s550_s19] sm:$0xff]  ;;  %s1635_s29 = sshll.u32 %s533_s26, 3 }
  0x3c   : > { %645 = vmatpush.msra.mxu1 %v586_v4  ;;  %v1215_v11 = vld [vmem:[%s572_s23] ss:$0 sm:$0xff]  ;;  %s535_s23 = scalar_lea.vmem [#allocation5], %s1635_s29 }
  0x3d   : > { %s546_s12 = scalar_lea.vmem %s1840_s0, %s1078_s14  ;;  %618 = vmatpush.msra.mxu0 %v582_v5  ;;  %s1086_s14 = sshll.u32 %s1598_s21, 3  ;;  %v1216_v28 = vld [vmem:[%s578_s18] ss:$0 sm:$0xff] }
  0x3e   : > { %v579_v9 = vld [vmem:[%s546_s12] sm:$0xff]  ;;  %646 = vmatpush.msra.mxu1 %v585_v6  ;;  %s1808_s21 = scalar_lea.vmem [#allocation7], %s1635_s29 }
  0x3f   : > { %619 = vmatpush.msra.mxu0 %v581_v7  ;;  %1088 = vmatmul.msk.f32.vlgmr.msra.gmra.mxu1 %vm600_vm0, %v580_v8  ;;  %s565_s7 = scalar_lea.vmem %s1841_s4, %s1601_s24 }
  0x40   : > { %1087 = vmatmul.msk.f32.vlgmr.msra.gmra.mxu0 %vm600_vm0, %v579_v9  ;;  %v592_v17 = vld [vmem:[%s565_s7 + $0x18] sm:$0xff]  ;;  %v591_v20 = vld [vmem:[%s565_s7 + $0x10] sm:$0xff]  ;;  %v590_v21 = vld [vmem:[%s565_s7 + $0x8] sm:$0xff]  ;;  %s569_s19 = scalar_lea.vmem %s1842_s5, %s1086_s14 }
  0x41   : > { %666 = vmatpush.msra.mxu2 %v592_v17  ;;  %v589_v22 = vld [vmem:[%s565_s7] sm:$0xff] }
  0x42   : > { %v593_v31 = vld [vmem:[%s569_s19] sm:$0xff] }
  0x43   : > { %667 = vmatpush.msra.mxu2 %v591_v20  ;;  %768 = vmatpush.msrb.mxu0 %v593_v31 }
  0x45   : > { %668 = vmatpush.msra.mxu2 %v590_v21 }
  0x47   : > { %669 = vmatpush.msra.mxu2 %v589_v22 }
  0x48   : > { %1089 = vmatmul.msk.f32.vlgmr.msra.gmra.mxu2 %vm600_vm0, %v580_v8 }
  0xbc   : > { %v648_v12 = vpop.f32.mrf.mxu1 }
  0xbd   : > { %v621_v13 = vpop.f32.mrf.mxu0  ;;  %v649_v14 = vadd.f32 %v1214_v10, %v648_v12 }
  0xbe   : > { %v622_v15 = vadd.f32 %v1215_v11, %v621_v13 }
  0xbf   : > { %1090 = vmatpush.xpose.msk.msra.mxu3 %vm674_vm1, %v649_v14 }
  0xc0   : > { %v624_v16 = vmul.f32 0.35355338, %v622_v15 }
  0xc2   : > { %1091 = vmatmul.msk.f32.vlgmr.msra.gmra.mxu3 %vm674_vm1, %v624_v16 }
  0xcb   : > { %v671_v29 = vpop.f32.mrf.mxu2 }
  0xcc   : > { %v672_v30 = vadd.f32 %v1216_v28, %v671_v29 }
  0xce   : > { %745 = vmatpush.msrb.mxu3 %v672_v30 }
 0x145   : > { %v698_v18 = vpop.f32.mrf.mxu3 }
 0x146   : > { %725 = vst.msk [vmem:[%s535_s23] sm:$0xff] %vm674_vm1, %v698_v18  ;;  %v701_v19 = vsel %vm674_vm1, %v698_v18, -inf }
 0x147   : > { %702 = vmax.xlane.f32.xlu0 %v701_v19 }
 0x1ba   : > { %v703_v23 = vpop.xlane.xlu0 %702 }
 0x1bb   : > { %v704_v24 = vsub.f32 %v698_v18, %v703_v23 }
 0x1bd   : > { %v705_v25 = vmul.f32 1.442695, %v704_v24 }
 0x1bf   : > { %1217 = vpow2.f32 %v705_v25 }
 0x1c5   : > { %v1218_v26 = vpop.eup %1217 }
 0x1c6   : > { %v707_v27 = vsel %vm674_vm1, %v1218_v26, 0.0 }
 0x1c7   : > { %708 = vadd.xlane.f32.xlu0 %v707_v27 }
 0x23a   : > { %v709_v32 = vpop.xlane.xlu0 %708 }
 0x23b   : > { %1219 = vrcp.f32 %v709_v32  ;;  %v721_v36 = vand.u32 2147483648, %v709_v32  ;;  %v719_v38 = vand.u32 2147483647, %v709_v32  ;;  %vm715_vm3 = vweird.f32 %v709_v32 }
 0x23d   : > { %v722_v40 = vor.u32 1.1754944e-38, %v721_v36  ;;  %vm720_vm5 = vcmp.eq.f32.partialorder %v719_v38, 8.507059e+37 }
 0x241   : > { %v1220_v33 = vpop.eup %1219 }
 0x242   : > { %v711_v34 = vmul.f32 %v1220_v33, %v709_v32  ;;  %vm716_vm2 = vweird.f32 %v1220_v33 }
 0x243   : > { %vm717_vm4 = vmor %vm715_vm3, %vm716_vm2 }
 0x244   : > { %v712_v35 = vsub.f32 1.0, %v711_v34 }
 0x246   : > { %v713_v37 = vmul.f32 %v1220_v33, %v712_v35 }
 0x248   : > { %v714_v39 = vadd.f32 %v1220_v33, %v713_v37 }
 0x24a   : > { %v718_v41 = vsel %vm717_vm4, %v1220_v33, %v714_v39 }
 0x24b   : > { %v723_v42 = vsel %vm720_vm5, %v722_v40, %v718_v41 }
 0x24c   : > { %v724_v43 = vmul.f32 %v1218_v26, %v723_v42 }
 0x24e   : > { %726 = vst.msk [vmem:[%s1808_s21] sm:$0xff] %vm674_vm1, %v724_v43  ;;  %1092 = vmatmul.msk.f32.vlgmr.msrb.gmra.mxu3 %vm674_vm1, %v724_v43 }
 0x2d1   : > { %v747_v44 = vpop.f32.mrf.mxu3 }
 0x2d2   : > { %1093 = vmatmul.msk.f32.vlgmr.msrb.gmra.mxu0 %vm674_vm1, %v747_v44 }
 0x34b   : > { %776 = sbr.rel (%p1094_p6) target bundleno = 850 (0x352), region = 64 }
 0x34f   : > { %v770_v45 = vpop.f32.mrf.mxu0 }
 0x350   : > { %v1402_v46 = vmov 0.0  }
 0x351   : > { %777 = vst.msk [vmem:[#allocation2] sm:$0xff] %vm600_vm0, %v1402_v46 }
 0x352 PF: > { %s1843_s12 = sadd.s32 4294967295, %s1400_s13   ;;  %s1099_s3 = sshll.u32 %s1388_s28, 2 }
 0x353   : > { %s1663_s2 = sand.u32 1, %s1843_s12   ;;  %s1667_s7 = sadd.s32 %s1384_s27, %s1099_s3 }
 0x354   : > { %s827_s26 = sshll.u32 %s535_s23, 4  ;;  %s1100_s30 = sshll.u32 %s1667_s7, 3  ;;  %s828_s26 = int_to_ptr.vmem [resolvable:$true] %s827_s26 }
 0x355   : > { %s1844_s14 = sld [smem:[#allocation29_spill]]  ;;  %s1098_s19 = sshll.u32 %s1388_s28, 3 }
 0x356   : > { %s1845_s16 = sld [smem:[#allocation28_spill]]  ;;  %s794_s23 = scalar_lea.sflag [#allocation6], %s1663_s2 }
 0x357   : > { %s1846_s1 = sld [smem:[#allocation27_spill]] }
 0x358   : > { %v778_v47 = vld [vmem:[#allocation2] sm:$0xff] }
 0x359   : > { %v779_v48 = vadd.f32 %v778_v47, %v770_v45 }
 0x35b   : > { %780 = vst.msk [vmem:[#allocation2] sm:$0xff] %vm600_vm0, %v779_v48  ;;  %s825_s15 = scalar_lea.hbm %s1844_s14, %s1100_s30  ;;  %s1242_s28 = scalar_lea.hbm %s1844_s14, 64 }
 0x35c   : > { %s829_s17 = sshll.u32 %s825_s15, 4  ;;  %s809_s27 = scalar_lea.hbm %s1845_s16, %s1098_s19  ;;  %s830_s17 = int_to_ptr.hbm [resolvable:$true] %s829_s17 }
 0x35d   : > { %v1221_v49 = vld [vmem:[%s1846_s1] ss:$0 sm:$0xff]  ;;  %s1236_s4 = sshra.s32 %s830_s17, 4  ;;  %s1237_s4 = int_to_ptr.hbm [resolvable:$true] %s1236_s4 }
 0x35e   : > { %s1238_s7 = scalar_lea.hbm %s1237_s4, 8  ;;  %p1243_p11 = scmp.lt.s32.totalorder %s1237_s4, %s1844_s14 }
 0x35f   : > { %p1239_p8 = scmp.ne.s32.totalorder %s1237_s4, %s1238_s7  ;;  %p1244_p0 = scmp.lt.s32.totalorder %s1242_s28, %s1238_s7 }
 0x361   : > { %p1240_p9 = pnand %p1239_p8, %p1572_p12  ;;  %p1245_p1 = por %p1244_p0, %p1243_p11 }
 0x363   : > { %p1241_p10 = pneg %p1240_p9 }
 0x365   : > { %p1246_p4 = pnand %p1245_p1, %p1241_p10 }
 0x367   : > { %1249 = shalt.err (!%p1246_p4)
}
 0x368   : > { %1109 = dma.vmem_to_hbm [thread:$0]  (%p1572_p12), %s828_s26, 128, %s830_s17, %s794_s23   ;;  %v781_v50 = vld [vmem:[#allocation2] sm:$0xff] }
 0x369   : > { %s1847_s0 = scalar_lea.vmem [#allocation3], %s1594_s9  ;;  %s813_s21 = sshll.u32 %s809_s27, 4  ;;  %v786_v51 = vadd.f32 %v1221_v49, %v781_v50  ;;  %s1701_s21 = int_to_ptr.hbm [resolvable:$true] %s813_s21 }
 0x36a   : > { %s1698_s1 = sshll.u32 %s1847_s0, 4  ;;  %s1848_s19 = sld [smem:[#allocation30_spill]]  ;;  %s812_s1 = int_to_ptr.vmem [resolvable:$true] %s1698_s1 }
 0x36b   : > { %s1849_s3 = scalar_lea.vmem [#allocation7], %s1635_s29  ;;  %s1850_s26 = smov %s1847_s0 }
 0x36c   : > { %s843_s7 = sshll.u32 %s1849_s3, 4  ;;  %787 = vst.msk [vmem:[%s1850_s26] sm:$0xff] %vm600_vm0, %v786_v51  ;;  %s844_s7 = int_to_ptr.vmem [resolvable:$true] %s843_s7 }
 0x370   : > { %s841_s12 = scalar_lea.hbm %s1848_s19, %s1100_s30  ;;  %s1270_s30 = scalar_lea.hbm %s1848_s19, 64 }
 0x371   : > { %s845_s24 = sshll.u32 %s841_s12, 4  ;;  %s846_s24 = int_to_ptr.hbm [resolvable:$true] %s845_s24 }
 0x372   : > { %s1264_s17 = sshra.s32 %s846_s24, 4  ;;  %s1265_s17 = int_to_ptr.hbm [resolvable:$true] %s1264_s17 }
 0x373   : > { %s1266_s27 = scalar_lea.hbm %s1265_s17, 8  ;;  %p1271_p8 = scmp.lt.s32.totalorder %s1265_s17, %s1848_s19 }
 0x374   : > { %p1267_p2 = scmp.ne.s32.totalorder %s1265_s17, %s1266_s27  ;;  %p1272_p9 = scmp.lt.s32.totalorder %s1270_s30, %s1266_s27 }
 0x376   : > { %p1268_p5 = pnand %p1267_p2, %p1572_p12  ;;  %p1273_p10 = por %p1272_p9, %p1271_p8 }
 0x378   : > { %p1269_p6 = pneg %p1268_p5 }
 0x37a   : > { %p1274_p11 = pnand %p1273_p10, %p1269_p6 }
 0x37c   : > { %1277 = shalt.err (!%p1274_p11)
}
 0x37d   : > { %1110 = dma.vmem_to_hbm [thread:$0]  (%p1572_p12), %s844_s7, 128, %s846_s24, %s794_s23  }
 0x37e   : > { %s1852_s0 = sand.u32 1, %s1376_s25   ;;  %s1292_s5 = sshra.s32 %s1701_s21, 4  ;;  %s1293_s5 = int_to_ptr.hbm [resolvable:$true] %s1292_s5 }
 0x37f   : > { %s789_s4 = scalar_lea.sflag [#allocation4], %s1852_s0  ;;  %s1294_s12 = scalar_lea.hbm %s1293_s5, 8 }
 0x380   : > { %p1295_p0 = scmp.ne.s32.totalorder %s1293_s5, %s1294_s12  ;;  %s1298_s17 = scalar_lea.hbm %s1845_s16, 16 }
 0x381   : > { %p1299_p2 = scmp.lt.s32.totalorder %s1293_s5, %s1845_s16  ;;  %p1300_p5 = scmp.lt.s32.totalorder %s1298_s17, %s1294_s12 }
 0x382   : > { %p1296_p1 = pnand %p1295_p0, %p1541_p3 }
 0x383   : > { %p1301_p6 = por %p1300_p5, %p1299_p2 }
 0x384   : > { %p1297_p4 = pneg %p1296_p1 }
 0x386   : > { %p1302_p12 = pnand %p1301_p6, %p1297_p4 }
 0x388   : > { %1305 = shalt.err (!%p1302_p12)
}
 0x389   : > { %1108 = dma.vmem_to_hbm [thread:$0]  (%p1541_p3), %s812_s1, 128, %s1701_s21, %s789_s4  }
 0x38a PF: > { %s1853_s2 = sld [smem:[#allocation11_spill]]  ;;  %p1124_p8 = scmp.ge.s32.totalorder %s1400_s13, 2 }
 0x38c   : > { %p1115_p9 = pnand %p1124_p8, %p1560_p7 }
 0x38e   : > { %p1116_p10 = pneg %p1115_p9 }
 0x390   : > { %s857_s23 = sand.u32 1, %s1853_s2  }
 0x391   : > { %s858_s7 = scalar_lea.sflag [#allocation4], %s857_s23 }
 0x392   : > { %1351 = dma.done.wait (%p1116_p10), %s858_s7, 128  }
 0x393   : > { %1353 = vsyncadd (%p1116_p10), %s858_s7, 4294967168  ;;  %s1854_s24 = sadd.s32 4294967294, %s1400_s13   ;;  %p1118_p11 = pnand %p1124_p8, %p1584_p13 }
 0x394   : > { %s867_s18 = sand.u32 1, %s1854_s24  }
 0x395   : > { %p1119_p0 = pneg %p1118_p11  ;;  %s868_s1 = scalar_lea.sflag [#allocation6], %s867_s18 }
 0x397   : > { %1355 = dma.done.wait (%p1119_p0), %s868_s1, 256  }
 0x398   : > { %1357 = vsyncadd (%p1119_p0), %s868_s1, 4294967040  ;;  %s29_s13 = sadd.s32 1, %s1400_s13   ;;  %s1855_s20 = sld [smem:[#allocation10_spill]] }
 0x399   : > { %p26_p3 = scmp.ge.s32.totalorder %s29_s13, 10   ;;  %s1856_s23 = sld [smem:[#allocation19_spill]] }
 0x39a   : > { %s1857_s28 = sld [smem:[#allocation12_spill]]  ;;  %s1863_s21 = smov %s1364_s22 }
 0x39b   : > { %s1858_s26 = sld [smem:[#allocation18_spill]]  ;;  %s1865_s24 = smov %s1376_s25 }
 0x39c   : > { %s1859_s27 = sld [smem:[#allocation13_spill]] }
 0x39d   : > { %s1860_s30 = sld [smem:[#allocation14_spill]] }
 0x39e   : > { %s1861_s29 = sld [smem:[#allocation15_spill]]  ;;  %s1864_s22 = smov %s1855_s20 }
 0x39f   : > { %s1862_s15 = sld [smem:[#allocation17_spill]] }
 0x3a0   : > { %s1866_s25 = smov %s1857_s28 }
 0x3a1   :  { %28 = sbr.rel (!%p26_p3) target bundleno = 21 (0x15), region = 155 }
 0x3a3   : > { %s1867_s28 = smov %s1860_s30 }
 0x3a5   : > { %s1868_s30 = smov %s1862_s15 }
 0x3a6   :  { %884 = vsyncpa [#allocation4], 1 }
 0x3a7   :  { %886 = vsyncpa [#allocation4 + $0x1], 1 }
 0x3a8   :  { %887 = vsyncpa [#allocation6], 1 }
 0x3a9   :  { %889 = vsyncpa [#allocation6 + $0x1], 1 }

</bundles_post_ra>
